<compile_context>
chip_gen: v7x
topology: tpu7x:2x2x1
jax: 0.10.0
libtpu: 0.0.40
codegen_flags: <defaults>
</compile_context>

<pallas_src>
import functools
import math

import jax
import jax.numpy as jnp
from jax import lax
from jax.experimental import pallas as pl
from jax.experimental.pallas import tpu as pltpu


def attention_kernel(x_ref, w1_ref, b1_ref, s2_ref, bfc_ref, o_ref, *, T, D, L):
    # x:   (bm, T*D)                      flattened tokens, batch on sublanes
    # w1:  (T*D, 2*T*T*D + T*T*L*D)       fused projection (q-dup | k-arr | v*wfc)
    # b1:  (1,  2*T*T*D + T*T*L*D)        fused bias (positional emb folded in)
    # s2:  (T*T*D + T*T*L*D, T*T + T*T*L) 0/1 lane-segment-sum matrix
    # bfc: (1, L)                         fc bias
    # o:   (bm, L)
    TT = T * T
    C1 = TT * D

    # One fused MXU matmul: per pair c = i*T + j, segment c of qd holds q_i
    # (scale folded in), segment c of ka holds k_j, segment (c, l) of vw holds
    # v_j elementwise-scaled by wfc[i, :, l].
    h = jnp.dot(x_ref[...], w1_ref[...],
                preferred_element_type=jnp.float32) + b1_ref[...]
    qd = h[:, :C1]            # 128-lane-aligned slices -> no lane shifts
    ka = h[:, C1:2 * C1]
    vw = h[:, 2 * C1:]

    # Lane-segment sums via a constant 0/1 matrix on the MXU: scores and the
    # fc-projected values in one shot, everything stays rank-2.
    pk = jnp.concatenate([qd * ka, vw], axis=-1)
    sp = jnp.dot(pk, s2_ref[...], preferred_element_type=jnp.float32)
    s = sp[:, :TT]            # scores, column c = i*T + j  (query i, key j)
    pv = sp[:, TT:]           # pv, column c*L + l = v_j . wfc[i, :, l]

    # Softmax over the QUERY axis i for each key column j (nn.Softmax(dim=1)).
    rows = [s[:, i * T:(i + 1) * T] for i in range(T)]   # each (bm, T), cols j
    m = rows[0]
    for i in range(1, T):
        m = jnp.maximum(m, rows[i])
    es = [jnp.exp(r - m) for r in rows]
    denom = es[0]
    for i in range(1, T):
        denom = denom + es[i]
    inv = 1.0 / denom

    # y[:, l] = sum_ij attn_ij * (v_j . wfc[i, :, l]) + bfc[l]
    y = jnp.zeros((x_ref.shape[0], L), jnp.float32)
    for i in range(T):
        a_i = es[i] * inv                                # (bm, T), columns j
        for j in range(T):
            c = i * T + j
            y = y + a_i[:, j:j + 1] * pv[:, c * L:(c + 1) * L]
    o_ref[...] = (y + bfc_ref[...]).astype(o_ref.dtype)


def build_operands(params, T, D, L):
    """Fold pos-emb, 1/sqrt(D), token-pair structure and fc into constants."""
    scale = 1.0 / math.sqrt(float(D))
    wq = params['wq'] * scale
    bq = params['bq'] * scale
    wk, bk = params['wk'], params['bk']
    wv, bv = params['wv'], params['bv']
    wfc = params['wfc']                       # (T, D, L)
    pos = params['pos']                       # (T, D)

    q_bias = pos @ wq + bq                    # (T, D)  per-token, pos folded
    k_bias = pos @ wk + bk
    v_bias = pos @ wv + bv

    TT = T * T
    C1 = TT * D
    CV = TT * L * D
    TD = T * D

    W1 = jnp.zeros((TD, 2 * C1 + CV), jnp.float32)
    b1 = jnp.zeros((1, 2 * C1 + CV), jnp.float32)
    S2 = jnp.zeros((C1 + CV, TT + TT * L), jnp.float32)

    for i in range(T):
        for j in range(T):
            c = i * T + j
            # Q block: segment c holds q_i (duplicated per key token j).
            W1 = W1.at[i * D:(i + 1) * D, c * D:(c + 1) * D].set(wq)
            b1 = b1.at[:, c * D:(c + 1) * D].set(q_bias[i][None, :])
            # K block: segment c holds k_j.
            off = C1 + c * D
            W1 = W1.at[j * D:(j + 1) * D, off:off + D].set(wk)
            b1 = b1.at[:, off:off + D].set(k_bias[j][None, :])
            # score segment-sum: (q_i*k_j) segment c -> score column c.
            S2 = S2.at[c * D:(c + 1) * D, c].set(1.0)
            for l in range(L):
                # V block: segment (c,l) holds v_j scaled by the fc weights
                # of query token i / output feature l (fc folded in).
                seg = (c * L + l) * D
                W1 = W1.at[j * D:(j + 1) * D,
                           2 * C1 + seg:2 * C1 + seg + D].set(
                               wv * wfc[i, :, l][None, :])
                b1 = b1.at[:, 2 * C1 + seg:2 * C1 + seg + D].set(
                    (v_bias[j] * wfc[i, :, l])[None, :])
                # pv segment-sum: vw segment (c,l) -> pv column c*L + l.
                S2 = S2.at[C1 + seg:C1 + seg + D, TT + c * L + l].set(1.0)
    return W1, b1, S2


def pick_block_rows(batch, target=2048):
    # Fixed tile + cdiv grid; the ragged last block is masked by Pallas — no
    # "bm = batch" fallback.  Mid-sized batches are split into >= 2 blocks so
    # v7x's two TensorCores both get a block.
    if batch <= 8:
        return batch
    if batch <= 2 * target:
        half = -(-batch // 2)
        return min(batch, -(-half // 8) * 8)
    return target


def transformer_attention_forward(x, params, *, block_rows=2048):
    B, T, D = x.shape
    L = params['bfc'].shape[-1]

    W1, b1, S2 = build_operands(params, T, D, L)
    x_flat = x.reshape(B, T * D)          # wrapper-side flatten (free, no copy)

    bm = pick_block_rows(B, block_rows)
    grid = (pl.cdiv(B, bm),)
    N1 = W1.shape[1]
    K2, N2 = S2.shape

    kernel = functools.partial(attention_kernel, T=T, D=D, L=L)
    return pl.pallas_call(
        kernel,
        out_shape=jax.ShapeDtypeStruct((B, L), jnp.float32),
        grid=grid,
        in_specs=[
            pl.BlockSpec((bm, T * D), lambda i: (i, 0)),   # x rows (streamed)
            pl.BlockSpec((T * D, N1), lambda i: (0, 0)),   # fused projection W
            pl.BlockSpec((1, N1), lambda i: (0, 0)),       # fused bias (+pos)
            pl.BlockSpec((K2, N2), lambda i: (0, 0)),      # segment-sum matrix
            pl.BlockSpec((1, L), lambda i: (0, 0)),        # fc bias
        ],
        out_specs=pl.BlockSpec((bm, L), lambda i: (i, 0)),
        compiler_params=pltpu.CompilerParams(
            dimension_semantics=("parallel",),
            vmem_limit_bytes=32 * 1024 * 1024),
    )(x_flat, W1, b1, S2, params['bfc'])


def reference_forward(x, params):
    # Pure-JAX reference reproducing the PyTorch forward exactly.
    hp = lax.Precision.HIGHEST
    xp = x + params['pos'][None, :, :]
    q = jnp.einsum('btd,de->bte', xp, params['wq'], precision=hp) + params['bq']
    k = jnp.einsum('btd,de->bte', xp, params['wk'], precision=hp) + params['bk']
    v = jnp.einsum('btd,de->bte', xp, params['wv'], precision=hp) + params['bv']
    D = x.shape[-1]
    attn = jnp.einsum('bqd,bkd->bqk', q, k, precision=hp) / jnp.sqrt(jnp.float32(D))
    attn = jax.nn.softmax(attn, axis=1)        # nn.Softmax(dim=1)
    out = jnp.einsum('bqk,bkd->bqd', attn, v, precision=hp)
    flat = out.reshape(out.shape[0], -1)
    wfc_flat = params['wfc'].reshape(-1, params['wfc'].shape[-1])
    return jnp.dot(flat, wfc_flat, precision=hp) + params['bfc']


def init_params(key, input_dim, token_num, last_dim):
    ks = jax.random.split(key, 8)
    s = 1.0 / math.sqrt(input_dim)
    params = {
        # Linear weights stored transposed (in_dim, out_dim): y = x @ W + b
        'wq': jax.random.uniform(ks[0], (input_dim, input_dim), jnp.float32, -s, s),
        'bq': jax.random.uniform(ks[1], (1, input_dim), jnp.float32, -s, s),
        'wk': jax.random.uniform(ks[2], (input_dim, input_dim), jnp.float32, -s, s),
        'bk': jax.random.uniform(ks[3], (1, input_dim), jnp.float32, -s, s),
        'wv': jax.random.uniform(ks[4], (input_dim, input_dim), jnp.float32, -s, s),
        'bv': jax.random.uniform(ks[5], (1, input_dim), jnp.float32, -s, s),
        # fc: (input_dim * token_num) -> last_dim, stored as (T, D, L)
        'wfc': jax.random.uniform(ks[6], (token_num, input_dim, last_dim),
                                  jnp.float32, -s, s),
        'bfc': jax.random.uniform(ks[7], (1, last_dim), jnp.float32, -s, s),
        # PyTorch inits position_embeddings to zeros; use small deterministic
        # nonzero values so the positional path is actually exercised.
        'pos': (jnp.arange(token_num * input_dim, dtype=jnp.float32)
                .reshape(token_num, input_dim) * 0.01),
    }
    return params


if __name__ == "__main__":
    B, T, D, L = 2, 2, 32, 1   # batch, token_num, input_dim, last_dim
    key = jax.random.PRNGKey(0)
    kx, kp, kx2 = jax.random.split(key, 3)
    x = jax.random.normal(kx, (B, T, D), jnp.float32)
    params = init_params(kp, D, T, L)

    y = jax.block_until_ready(transformer_attention_forward(x, params))
    y_ref = reference_forward(x, params)
    assert y.shape == (B, L)
    assert jnp.allclose(y, y_ref, atol=1e-4, rtol=1e-4), (y, y_ref)

    # Also exercise the multi-block grid + ragged last block path.
    B2 = 52
    x2 = jax.random.normal(kx2, (B2, T, D), jnp.float32)
    y2 = jax.block_until_ready(transformer_attention_forward(x2, params))
    y2_ref = reference_forward(x2, params)
    assert jnp.allclose(y2, y2_ref, atol=1e-4, rtol=1e-4), (y2, y2_ref)

    print("KERNEL_OK")
</pallas_src>

<mosaic_0001>
module attributes {stable_mosaic.version = 11 : i64} {
  func.func @attention_kernel(%arg0: i32, %arg1: memref<2x64xf32, #tpu.memory_space<vmem>>, %arg2: memref<64x384xf32, #tpu.memory_space<vmem>>, %arg3: memref<1x384xf32, #tpu.memory_space<vmem>>, %arg4: memref<256x8xf32, #tpu.memory_space<vmem>>, %arg5: memref<1x1xf32, #tpu.memory_space<vmem>>, %arg6: memref<2x1xf32, #tpu.memory_space<vmem>>) attributes {dimension_semantics = [#tpu.dimension_semantics<parallel>], iteration_bounds = array<i64: 1>, scalar_prefetch = 0 : i64, scratch_operands = 0 : i64, tpu.core_type = #tpu.core_type<tc>, window_params = [{transform_indices = @transform_0, window_bounds = array<i64: 2, 64>}, {pipeline_mode = #tpu.pipeline_mode<synchronous>, transform_indices = @transform_1, window_bounds = array<i64: 64, 384>}, {pipeline_mode = #tpu.pipeline_mode<synchronous>, transform_indices = @transform_2, window_bounds = array<i64: 1, 384>}, {pipeline_mode = #tpu.pipeline_mode<synchronous>, transform_indices = @transform_3, window_bounds = array<i64: 256, 8>}, {pipeline_mode = #tpu.pipeline_mode<synchronous>, transform_indices = @transform_4, window_bounds = array<i64: 1, 1>}, {transform_indices = @transform_5, window_bounds = array<i64: 2, 1>}]} {
    %c0 = arith.constant 0 : index
    %c0_0 = arith.constant 0 : index
    %0 = vector.load %arg1[%c0, %c0_0] : memref<2x64xf32, #tpu.memory_space<vmem>>, vector<2x64xf32>
    %c0_1 = arith.constant 0 : index
    %c0_2 = arith.constant 0 : index
    %1 = vector.load %arg2[%c0_1, %c0_2] : memref<64x384xf32, #tpu.memory_space<vmem>>, vector<64x384xf32>
    %cst = arith.constant dense<0.000000e+00> : vector<2x384xf32>
    %2 = tpu.matmul %0, %1, %cst {dimension_numbers = #tpu.dot_dimension_numbers<[1], [0], [0], [1], [0, 0, 1, 1], [], []>} : vector<2x64xf32>, vector<64x384xf32>, vector<2x384xf32> -> vector<2x384xf32>
    %c0_3 = arith.constant 0 : index
    %c0_4 = arith.constant 0 : index
    %3 = vector.load %arg3[%c0_3, %c0_4] : memref<1x384xf32, #tpu.memory_space<vmem>>, vector<1x384xf32>
    %4 = vector.broadcast %3 : vector<1x384xf32> to vector<2x384xf32>
    %5 = arith.addf %2, %4 : vector<2x384xf32>
    %6 = vector.extract_strided_slice %5 {offsets = [0, 0], sizes = [2, 128], strides = [1, 1]} : vector<2x384xf32> to vector<2x128xf32>
    %7 = vector.extract_strided_slice %5 {offsets = [0, 128], sizes = [2, 128], strides = [1, 1]} : vector<2x384xf32> to vector<2x128xf32>
    %8 = vector.extract_strided_slice %5 {offsets = [0, 256], sizes = [2, 128], strides = [1, 1]} : vector<2x384xf32> to vector<2x128xf32>
    %9 = arith.mulf %6, %7 : vector<2x128xf32>
    %10 = tpu.concatenate %9, %8 in 1 : vector<2x128xf32>, vector<2x128xf32> -> vector<2x256xf32>
    %c0_5 = arith.constant 0 : index
    %c0_6 = arith.constant 0 : index
    %11 = vector.load %arg4[%c0_5, %c0_6] : memref<256x8xf32, #tpu.memory_space<vmem>>, vector<256x8xf32>
    %cst_7 = arith.constant dense<0.000000e+00> : vector<2x8xf32>
    %12 = tpu.matmul %10, %11, %cst_7 {dimension_numbers = #tpu.dot_dimension_numbers<[1], [0], [0], [1], [0, 0, 1, 1], [], []>} : vector<2x256xf32>, vector<256x8xf32>, vector<2x8xf32> -> vector<2x8xf32>
    %13 = vector.extract_strided_slice %12 {offsets = [0, 0], sizes = [2, 4], strides = [1, 1]} : vector<2x8xf32> to vector<2x4xf32>
    %14 = vector.extract_strided_slice %12 {offsets = [0, 4], sizes = [2, 4], strides = [1, 1]} : vector<2x8xf32> to vector<2x4xf32>
    %15 = vector.extract_strided_slice %13 {offsets = [0, 0], sizes = [2, 2], strides = [1, 1]} : vector<2x4xf32> to vector<2x2xf32>
    %16 = vector.extract_strided_slice %13 {offsets = [0, 2], sizes = [2, 2], strides = [1, 1]} : vector<2x4xf32> to vector<2x2xf32>
    %17 = arith.maximumf %15, %16 : vector<2x2xf32>
    %18 = arith.subf %15, %17 : vector<2x2xf32>
    %19 = math.exp %18 : vector<2x2xf32>
    %20 = arith.subf %16, %17 : vector<2x2xf32>
    %21 = math.exp %20 : vector<2x2xf32>
    %22 = arith.addf %19, %21 : vector<2x2xf32>
    %cst_8 = arith.constant 1.000000e+00 : f32
    %23 = vector.broadcast %cst_8 : f32 to vector<2x2xf32>
    %24 = arith.divf %23, %22 : vector<2x2xf32>
    %cst_9 = arith.constant 0.000000e+00 : f32
    %25 = vector.broadcast %cst_9 : f32 to vector<2x1xf32>
    %26 = arith.mulf %19, %24 : vector<2x2xf32>
    %27 = vector.extract_strided_slice %26 {offsets = [0, 0], sizes = [2, 1], strides = [1, 1]} : vector<2x2xf32> to vector<2x1xf32>
    %28 = vector.extract_strided_slice %14 {offsets = [0, 0], sizes = [2, 1], strides = [1, 1]} : vector<2x4xf32> to vector<2x1xf32>
    %29 = arith.mulf %27, %28 : vector<2x1xf32>
    %30 = arith.addf %25, %29 : vector<2x1xf32>
    %31 = vector.extract_strided_slice %26 {offsets = [0, 1], sizes = [2, 1], strides = [1, 1]} : vector<2x2xf32> to vector<2x1xf32>
    %32 = vector.extract_strided_slice %14 {offsets = [0, 1], sizes = [2, 1], strides = [1, 1]} : vector<2x4xf32> to vector<2x1xf32>
    %33 = arith.mulf %31, %32 : vector<2x1xf32>
    %34 = arith.addf %30, %33 : vector<2x1xf32>
    %35 = arith.mulf %21, %24 : vector<2x2xf32>
    %36 = vector.extract_strided_slice %35 {offsets = [0, 0], sizes = [2, 1], strides = [1, 1]} : vector<2x2xf32> to vector<2x1xf32>
    %37 = vector.extract_strided_slice %14 {offsets = [0, 2], sizes = [2, 1], strides = [1, 1]} : vector<2x4xf32> to vector<2x1xf32>
    %38 = arith.mulf %36, %37 : vector<2x1xf32>
    %39 = arith.addf %34, %38 : vector<2x1xf32>
    %40 = vector.extract_strided_slice %35 {offsets = [0, 1], sizes = [2, 1], strides = [1, 1]} : vector<2x2xf32> to vector<2x1xf32>
    %41 = vector.extract_strided_slice %14 {offsets = [0, 3], sizes = [2, 1], strides = [1, 1]} : vector<2x4xf32> to vector<2x1xf32>
    %42 = arith.mulf %40, %41 : vector<2x1xf32>
    %43 = arith.addf %39, %42 : vector<2x1xf32>
    %c0_10 = arith.constant 0 : index
    %c0_11 = arith.constant 0 : index
    %44 = vector.load %arg5[%c0_10, %c0_11] : memref<1x1xf32, #tpu.memory_space<vmem>>, vector<1x1xf32>
    %45 = vector.broadcast %44 : vector<1x1xf32> to vector<2x1xf32>
    %46 = arith.addf %43, %45 : vector<2x1xf32>
    %c0_12 = arith.constant 0 : index
    %c0_13 = arith.constant 0 : index
    %47 = vector.load %arg6[%c0_12, %c0_13] : memref<2x1xf32, #tpu.memory_space<vmem>>, vector<2x1xf32>
    tpu.vector_store %arg6[%c0_12, %c0_13], %46 {strides = array<i32>} : memref<2x1xf32, #tpu.memory_space<vmem>>, vector<2x1xf32>,
    return
  }
  func.func @transform_0(%arg0: i32) -> (i32, i32) {
    %c0_i32 = arith.constant 0 : i32
    %c0_i32_0 = arith.constant 0 : i32
    return %arg0, %c0_i32 : i32, i32
  }
  func.func @transform_1(%arg0: i32) -> (i32, i32) {
    %c0_i32 = arith.constant 0 : i32
    %c0_i32_0 = arith.constant 0 : i32
    %c0_i32_1 = arith.constant 0 : i32
    return %c0_i32, %c0_i32_0 : i32, i32
  }
  func.func @transform_2(%arg0: i32) -> (i32, i32) {
    %c0_i32 = arith.constant 0 : i32
    %c0_i32_0 = arith.constant 0 : i32
    %c0_i32_1 = arith.constant 0 : i32
    return %c0_i32, %c0_i32_0 : i32, i32
  }
  func.func @transform_3(%arg0: i32) -> (i32, i32) {
    %c0_i32 = arith.constant 0 : i32
    %c0_i32_0 = arith.constant 0 : i32
    %c0_i32_1 = arith.constant 0 : i32
    return %c0_i32, %c0_i32_0 : i32, i32
  }
  func.func @transform_4(%arg0: i32) -> (i32, i32) {
    %c0_i32 = arith.constant 0 : i32
    %c0_i32_0 = arith.constant 0 : i32
    %c0_i32_1 = arith.constant 0 : i32
    return %c0_i32, %c0_i32_0 : i32, i32
  }
  func.func @transform_5(%arg0: i32) -> (i32, i32) {
    %c0_i32 = arith.constant 0 : i32
    %c0_i32_0 = arith.constant 0 : i32
    return %arg0, %c0_i32 : i32, i32
  }
}

</mosaic_0001>

<bundles_post_ra>
// kernel: tpu_custom_call.1
= control target key start
LH: loop header
LB: loop body
LE: loop exit
PB: predicated region body
PF: predicated region fallthrough
CT: control target
= control target key end

     0   :  { %v514_v3 = vmov 0.0   ;;  %vm64_vm0 = vcmask 523264   ;;  %v515_v46 = vmov 0.0|0.0   ;;  %vm516_vm1 = vmmov 0   ;;  %s519_s30 = smov 124   ;;  %s520_s6 = smov 127   ;;  %s739_s1 = inlined_call_operand.vmem [shape: f32[64,384], index: 1, kind: input, shape index: {}]   ;;  %s740_s3 = inlined_call_operand.vmem [shape: f32[256,8], index: 3, kind: input, shape index: {}]   ;;  %s741_s0 = inlined_call_operand.vmem [shape: f32[2,64], index: 0, kind: input, shape index: {}]   ;;  %s742_s2 = inlined_call_operand.vmem [shape: f32[1,384], index: 2, kind: input, shape index: {}]   ;;  %s743_s4 = inlined_call_operand.<no memory space> [shape: f32[1,1], index: 4, kind: input, shape index: {}]   ;;  %s744_s5 = inlined_call_operand.vmem [shape: f32[2,1], index: 5, kind: output, shape index: {}]  }
   0x1   :  { %v24_v0 = vld [vmem:[%s739_s1 + $0x8] sm:$0xff]  ;;  %v27_v1 = vld [vmem:[%s739_s1 + $0x20] sm:$0xff]  ;;  %132 = vmatprep.mubr.f32.mxu1 %v514_v3  ;;  %v26_v5 = vld [vmem:[%s739_s1 + $0x18] sm:$0xff]  ;;  %vm368_vm2 = vcmask 1024  }
   0x2   :  { %v23_v2 = vld [vmem:[%s739_s1] sm:$0xff]  ;;  %v440_v4 = vpack.c.bf16 %v27_v1, %v24_v0  ;;  %v30_v6 = vld [vmem:[%s739_s1 + $0x38] sm:$0xff]  ;;  %v33_v7 = vld [vmem:[%s739_s1 + $0x50] sm:$0xff] }
   0x3   :  { %v442_v8 = vpack.c.bf16 %v26_v5, %v23_v2  ;;  %v444_v9 = vpack.c.bf16 %v33_v7, %v30_v6  ;;  %v29_v10 = vld [vmem:[%s739_s1 + $0x30] sm:$0xff]  ;;  %v32_v11 = vld [vmem:[%s739_s1 + $0x48] sm:$0xff]  ;;  %v39_v13 = vld [vmem:[%s739_s1 + $0x80] sm:$0xff] }
   0x4   :  { %v36_v12 = vld [vmem:[%s739_s1 + $0x68] sm:$0xff]  ;;  %441 = vmatprep.subr.bf16.mxu1 %v440_v4  ;;  %v446_v14 = vpack.c.bf16 %v32_v11, %v29_v10  ;;  %v35_v16 = vld [vmem:[%s739_s1 + $0x60] sm:$0xff]  ;;  %v38_v17 = vld [vmem:[%s739_s1 + $0x78] sm:$0xff] }
   0x5   :  { %443 = vmatpush1.bf16.msra.mxu1 %v442_v8  ;;  %v448_v15 = vpack.c.bf16 %v39_v13, %v36_v12  ;;  %v42_v18 = vld [vmem:[%s739_s1 + $0x98] sm:$0xff]  ;;  %v45_v19 = vld [vmem:[%s739_s1 + $0xb0] sm:$0xff]  ;;  %v450_v21 = vpack.c.bf16 %v38_v17, %v35_v16  ;;  %v44_v22 = vld [vmem:[%s739_s1 + $0xa8] sm:$0xff] }
   0x6   :  { %445 = vmatprep.subr.bf16.mxu1 %v444_v9  ;;  %v41_v20 = vld [vmem:[%s739_s1 + $0x90] sm:$0xff]  ;;  %v226_v23 = vld [vmem:[%s740_s3 + $0x80] sm:$0xff]  ;;  %v227_v24 = vld [vmem:[%s740_s3 + $0x88] sm:$0xff]  ;;  %v452_v25 = vpack.c.bf16 %v45_v19, %v42_v18 }
   0x7   :  { %v468_v26 = vpack.c.bf16 %v227_v24, %v226_v23  ;;  %v210_v27 = vld [vmem:[%s740_s3] sm:$0xff]  ;;  %v211_v28 = vld [vmem:[%s740_s3 + $0x8] sm:$0xff]  ;;  %v228_v29 = vld [vmem:[%s740_s3 + $0x90] sm:$0xff]  ;;  %v454_v37 = vpack.c.bf16 %v44_v22, %v41_v20  ;;  %v49_v23 = vlaneseq }
   0x8   :  { %v470_v30 = vpack.c.bf16 %v211_v28, %v210_v27  ;;  %v229_v31 = vld [vmem:[%s740_s3 + $0x98] sm:$0xff]  ;;  %v212_v32 = vld [vmem:[%s740_s3 + $0x10] sm:$0xff]  ;;  %v230_v35 = vld [vmem:[%s740_s3 + $0xa0] sm:$0xff] }
   0x9   :  { %447 = vmatpush1.bf16.msra.mxu1 %v446_v14  ;;  %v213_v33 = vld [vmem:[%s740_s3 + $0x18] sm:$0xff]  ;;  %469 = vmatprep.subr.bf16.mxu0 %v468_v26  ;;  %v472_v34 = vpack.c.bf16 %v229_v31, %v228_v29  ;;  %v231_v36 = vld [vmem:[%s740_s3 + $0xa8] sm:$0xff]  ;;  %v25_v39 = vld [vmem:[%s739_s1 + $0x10] sm:$0xff]  ;;  %v50_v24 = vshrl.u32 %v49_v23, 7 }
   0xa   :  { %449 = vmatprep.subr.bf16.mxu1 %v448_v15  ;;  %471 = vmatpush3.bf16.msra.mxu0 %v470_v30  ;;  %v474_v38 = vpack.c.bf16 %v213_v33, %v212_v32  ;;  %v28_v40 = vld [vmem:[%s739_s1 + $0x28] sm:$0xff]  ;;  %v476_v41 = vpack.c.bf16 %v231_v36, %v230_v35  ;;  %v214_v42 = vld [vmem:[%s740_s3 + $0x20] sm:$0xff]  ;;  %v34_v48 = vld [vmem:[%s739_s1 + $0x58] sm:$0xff] }
   0xb   :  { %473 = vmatprep.subr.bf16.mxu0 %v472_v34  ;;  %v215_v43 = vld [vmem:[%s740_s3 + $0x28] sm:$0xff]  ;;  %v22_v44 = vld [vmem:[%s741_s0] sm:$0x3]  ;;  %v457_v45 = vpack.c.bf16 %v28_v40, %v25_v39  ;;  %v37_v51 = vld [vmem:[%s739_s1 + $0x70] sm:$0xff]  ;;  %v55_v27 = vsub.s32 1, %v50_v24  ;;  %v59_v35 = vsub.s32 2, %v50_v24 }
   0xc   :  { %v31_v47 = vld [vmem:[%s739_s1 + $0x40] sm:$0xff]  ;;  %v478_v49 = vpack.c.bf16 %v215_v43, %v214_v42  ;;  %v40_v52 = vld [vmem:[%s739_s1 + $0x88] sm:$0xff]  ;;  %v46_v55 = vld [vmem:[%s739_s1 + $0xb8] sm:$0xff]  ;;  %s521_s0 = smov 125  }
   0xd   :  { %451 = vmatpush1.bf16.msra.mxu1 %v450_v21  ;;  %v460_v50 = vpack.c.bf16 %v34_v48, %v31_v47  ;;  %v463_v53 = vpack.c.bf16 %v40_v52, %v37_v51  ;;  %v43_v54 = vld [vmem:[%s739_s1 + $0xa0] sm:$0xff]  ;;  %v232_v57 = vld [vmem:[%s740_s3 + $0xb0] sm:$0xff]  ;;  %v233_v58 = vld [vmem:[%s740_s3 + $0xb8] sm:$0xff] }
   0xe   :  { %453 = vmatprep.subr.bf16.mxu1 %v452_v25  ;;  %475 = vmatpush3.bf16.msra.mxu0 %v474_v38  ;;  %v466_v56 = vpack.c.bf16 %v46_v55, %v43_v54  ;;  %v480_v59 = vpack.c.bf16 %v233_v58, %v232_v57  ;;  %v216_v60 = vld [vmem:[%s740_s3 + $0x30] sm:$0xff]  ;;  %v217_v61 = vld [vmem:[%s740_s3 + $0x38] sm:$0xff]  ;;  %v234_v63 = vld [vmem:[%s740_s3 + $0xc0] sm:$0xff]  ;;  %v51_v25 = vsub.s32 0, %v50_v24  ;;  %v10_v58 = vstv %s743_s4 }
   0xf   :  { %477 = vmatprep.subr.bf16.mxu0 %v476_v41  ;;  %v482_v62 = vpack.c.bf16 %v217_v61, %v216_v60  ;;  %v235_v0 = vld [vmem:[%s740_s3 + $0xc8] sm:$0xff]  ;;  %v218_v2 = vld [vmem:[%s740_s3 + $0x40] sm:$0xff]  ;;  %v236_v5 = vld [vmem:[%s740_s3 + $0xd0] sm:$0xff]  ;;  %11 = vst [vmem:[#allocation2] sm:$0x1] %v10_v58 }
  0x10   :  { %v484_v1 = vpack.c.bf16 %v235_v0, %v234_v63  ;;  %v237_v6 = vld [vmem:[%s740_s3 + $0xd8] sm:$0xff]  ;;  %v220_v7 = vld [vmem:[%s740_s3 + $0x50] sm:$0xff]  ;;  %v238_v10 = vld [vmem:[%s740_s3 + $0xe0] sm:$0xff] }
  0x11   :  { %455 = vmatpush1.bf16.msra.mxu1 %v454_v37  ;;  %v488_v8 = vpack.c.bf16 %v237_v6, %v236_v5  ;;  %v221_v9 = vld [vmem:[%s740_s3 + $0x58] sm:$0xff]  ;;  %v239_v11 = vld [vmem:[%s740_s3 + $0xe8] sm:$0xff]  ;;  %v222_v14 = vld [vmem:[%s740_s3 + $0x60] sm:$0xff] }
  0x12   :  { %456 = vmatprep.subr.bf16.mxu1 %v515_v46  ;;  %479 = vmatpush3.bf16.msra.mxu0 %v478_v49  ;;  %v490_v12 = vpack.c.bf16 %v221_v9, %v220_v7  ;;  %v492_v13 = vpack.c.bf16 %v239_v11, %v238_v10  ;;  %v223_v15 = vld [vmem:[%s740_s3 + $0x68] sm:$0xff]  ;;  %v240_v17 = vld [vmem:[%s740_s3 + $0xf0] sm:$0xff]  ;;  %v241_v18 = vld [vmem:[%s740_s3 + $0xf8] sm:$0xff] }
  0x13   :  { %481 = vmatprep.subr.bf16.mxu0 %v480_v59  ;;  %v494_v16 = vpack.c.bf16 %v223_v15, %v222_v14  ;;  %v496_v19 = vpack.c.bf16 %v241_v18, %v240_v17  ;;  %v224_v20 = vld [vmem:[%s740_s3 + $0x70] sm:$0xff]  ;;  %v225_v21 = vld [vmem:[%s740_s3 + $0x78] sm:$0xff]  ;;  %v47_v26 = vld [vmem:[%s742_s2] sm:$0x7]  ;;  %s518_s2 = smov 2  }
  0x14   :  { %374 = vmatmul.mubr.msk.f32.vlgmr.msra.gmra.mrb[0].mxu1 %vm64_vm0, %v22_v44  ;;  %v498_v22 = vpack.c.bf16 %v225_v21, %v224_v20  ;;  %v52_v28 = vrot.slane %v47_v26, %v51_v25  ;;  %v56_v29 = vrot.slane %v47_v26, %v55_v27  ;;  %v60_v36 = vrot.slane %v47_v26, %v59_v35 }
  0x15   :  { %458 = vmatpush3.bf16.msra.mxu1 %v457_v45  ;;  %437 = vmatprep.mubr.msk.f32.mxu1 %vm516_vm1, %v514_v3  ;;  %v219_v3 = vld [vmem:[%s740_s3 + $0x48] sm:$0xff]  ;;  %s517_s3 = smov 126  }
  0x16   :  { %459 = vmatprep.subr.bf16.mxu1 %v515_v46  ;;  %483 = vmatpush3.bf16.msra.mxu0 %v482_v62  ;;  %v486_v4 = vpack.c.bf16 %v219_v3, %v218_v2  ;;  %v376_v2 = vld [vmem:[#allocation2] ss:$0 sm:$0xff] }
  0x17   :  { %485 = vmatprep.subr.bf16.mxu0 %v484_v1 }
  0x19   :  { %461 = vmatpush3.bf16.msra.mxu1 %v460_v50 }
  0x1a   :  { %462 = vmatprep.subr.bf16.mxu1 %v515_v46  ;;  %487 = vmatpush3.bf16.msra.mxu0 %v486_v4 }
  0x1b   :  { %489 = vmatprep.subr.bf16.mxu0 %v488_v8 }
  0x1d   :  { %464 = vmatpush3.bf16.msra.mxu1 %v463_v53 }
  0x1e   :  { %465 = vmatprep.subr.bf16.mxu1 %v515_v46  ;;  %491 = vmatpush3.bf16.msra.mxu0 %v490_v12 }
  0x1f   :  { %493 = vmatprep.subr.bf16.mxu0 %v492_v13 }
  0x21   :  { %467 = vmatpush3.bf16.msra.mxu1 %v466_v56 }
  0x22   :  { %495 = vmatpush3.bf16.msra.mxu0 %v494_v16 }
  0x23   :  { %497 = vmatprep.subr.bf16.mxu0 %v496_v19 }
  0x24   :  { %438 = vmatmul.mubr.msk.f32.vlgmr.msra.gmra.mrb[2].mxu1 %vm64_vm0, %v22_v44 }
  0x26   :  { %499 = vmatpush3.bf16.msra.mxu0 %v498_v22 }
  0xe7   :  { %v134_v30 = vpop.f32.mrb[0].mxu1 }
  0xe8   :  { %v135_v31 = vadd.f32 %v134_v30, %v52_v28  ;;  %v136_v32 = vpop.f32.mrb[1].mxu1 }
  0xe9   :  { %v137_v33 = vadd.f32 %v136_v32, %v56_v29 }
  0xeb   :  { %v209_v34 = vmul.f32 %v137_v33, %v135_v31 }
  0xf7   :  { %v205_v37 = vpop.f32.mrb[2].mxu1 }
  0xf8   :  { %v439_v38 = vpop.f32.mrb[3].mxu1  ;;  %v206_v39 = vadd.f32 %v205_v37, %v60_v36 }
  0xfa   :  { %306 = vmatprep.mubr.f32.mxu0 %v206_v39 }
  0xfb   :  { %307 = vmatmul.mubr.f32.vlgmr.msra.gmra.mrb[0].mxu0 %v209_v34 }
 0x1ce   :  { %v418_v40 = vpop.f32.mrb[0].mxu0 }
 0x1cf   :  { %v419_v41 = vpop.f32.mrb[1].mxu0 }
 0x1d0   :  { %v420_v42 = vadd.f32 %v419_v41, %v418_v40 }
 0x1d2   :  { %313 = vrot.lane.b32.xlu0 %v420_v42, %s517_s3 }
 0x244   :  { %v314_v43 = vpop.permute.xlu0 %313 }
 0x245   :  { %v316_v44 = vmax.f32 %v420_v42, %v314_v43 }
 0x247   :  { %321 = vrot.lane.b32.xlu0 %v316_v44, %s518_s2  ;;  %v317_v49 = vsub.f32 %v420_v42, %v316_v44 }
 0x249   :  { %v318_v50 = vmul.f32 1.442695, %v317_v49 }
 0x2b9   :  { %v322_v45 = vpop.permute.xlu0 %321 }
 0x2ba   :  { %v324_v46 = vsub.f32 %v420_v42, %v322_v45 }
 0x2bc   :  { %v325_v47 = vmul.f32 1.442695, %v324_v46 }
 0x2be   :  { %508 = vpow2.f32 %v325_v47 }
 0x2bf   :  { %510 = vpow2.f32 %v318_v50 }
 0x2c8   :  { %v509_v48 = vpop.eup %508 }
 0x2c9   :  { %328 = vrot.lane.b32.xlu1 %v509_v48, %s517_s3  ;;  %v511_v51 = vpop.eup %510 }
 0x2cd   :  { %335 = vrot.lane.b32.xlu1 %v420_v42, %s519_s30 }
 0x33b   :  { %v329_v52 = vpop.permute.xlu1 %328 }
 0x33c   :  { %v331_v53 = vadd.f32 %v511_v51, %v329_v52 }
 0x33e   :  { %512 = vrcp.f32 %v331_v53 }
 0x33f   :  { %v336_v56 = vpop.permute.xlu1 %335 }
 0x348   :  { %v513_v54 = vpop.eup %512 }
 0x349   :  { %v334_v55 = vmul.f32 %v513_v54, %v511_v51  ;;  %346 = vrot.lane.b32.xlu0 %v513_v54, %s518_s2 }
 0x34b   :  { %v338_v57 = vmul.f32 %v336_v56, %v334_v55 }
 0x34d   :  { %341 = vrot.lane.b32.xlu1 %v338_v57, %s520_s6 }
 0x3bb   :  { %v347_v59 = vpop.permute.xlu0 %346 }
 0x3bc   :  { %v349_v60 = vmul.f32 %v509_v48, %v347_v59 }
 0x3be   :  { %v350_v61 = vmul.f32 %v349_v60, %v336_v56 }
 0x3bf   :  { %v342_v62 = vpop.permute.xlu1 %341 }
 0x3c0   :  { %352 = vrot.lane.b32.xlu0 %v350_v61, %s517_s3  ;;  %356 = vrot.lane.b32.xlu1 %v350_v61, %s521_s0  ;;  %v344_v63 = vadd.f32 %v342_v62, %v338_v57 }
 0x432   :  { %v353_v0 = vpop.permute.xlu0 %352  ;;  %v357_v3 = vpop.permute.xlu1 %356 }
 0x433   :  { %v355_v1 = vadd.f32 %v353_v0, %v344_v63 }
 0x435   :  { %v359_v4 = vadd.f32 %v357_v3, %v355_v1 }
 0x437   :  { %v367_v5 = vadd.f32 %v376_v2, %v359_v4 }
 0x439   :  { %369 = vst.msk [vmem:[%s744_s5] sm:$0x3] %vm368_vm2, %v367_v5 }

</bundles_post_ra>
